<compile_context>
chip_gen: v5e
topology: v5e:2x2
jax: 0.10.0
libtpu: 0.0.40
codegen_flags: <defaults>
</compile_context>

<pallas_src>
import jax
import jax.numpy as jnp
from jax.experimental import pallas as pl
from jax.experimental.pallas import tpu as pltpu


def _dec_kernel(alpha: float, k_real: int, k_pad: int):
    inv_alpha = 1.0 / alpha
    power = -(alpha + 1.0) / 2.0
    alpha_is_one = (alpha == 1.0)

    def kernel(x_ref, w_ref, b_ref, ct_ref, c2_ref, q_ref):
        # --- encoder: feat = x @ W + b  (TB, H); matches `x_feature = x[0]` ---
        feat = jnp.dot(x_ref[...], w_ref[...],
                       preferred_element_type=jnp.float32) + b_ref[...]

        # --- squared distances via MXU: d = |f|^2 + |c|^2 - 2 f.c  (TB, Kpad) ---
        f2 = jnp.sum(feat * feat, axis=1, keepdims=True)            # (TB, 1)
        fc = jnp.dot(feat, ct_ref[...],
                     preferred_element_type=jnp.float32)            # (TB, Kpad)
        d = jnp.maximum(f2 + c2_ref[...] - 2.0 * fc, 0.0)

        # --- Student's t kernel ---
        if alpha_is_one:
            # power == -1 exactly -> EUP reciprocal instead of exp/log pow
            num = pl.reciprocal(1.0 + d, approx=True)
        else:
            num = (1.0 + d * inv_alpha) ** power

        # zero padded cluster columns so they don't pollute the row-sum
        if k_pad != k_real:
            col = jax.lax.broadcasted_iota(jnp.int32, num.shape, 1)
            num = jnp.where(col < k_real, num, 0.0)

        # --- row normalization (exact reciprocal: rows sum to 1 tightly) ---
        denom = jnp.sum(num, axis=1, keepdims=True)                 # (TB, 1)
        q_ref[...] = num * pl.reciprocal(denom, approx=False)

    return kernel


def dec_forward(batch, w, b, centers, alpha=1.0, block_b=512):
    B, d_in = batch.shape
    K, H = centers.shape
    assert w.shape == (d_in, H) and b.shape == (1, H)

    # Lane-dense output: pad K up to a multiple of 128.
    k_pad = max(128, pl.cdiv(K, 128) * 128)
    centers_f32 = centers.astype(jnp.float32)
    centers_t = jnp.zeros((H, k_pad), jnp.float32).at[:, :K].set(centers_f32.T)
    c2 = jnp.zeros((1, k_pad), jnp.float32).at[:, :K].set(
        jnp.sum(centers_f32 * centers_f32, axis=1)[None, :])

    # Batch tiling: whole batch if small, else fixed multiple-of-8 tiles.
    tb = B if B <= block_b else block_b
    n_blocks = pl.cdiv(B, tb)
    b_pad = n_blocks * tb
    x = batch if b_pad == B else jnp.pad(batch, ((0, b_pad - B), (0, 0)))

    flops = 2 * b_pad * d_in * H + 2 * b_pad * H * k_pad + 8 * b_pad * k_pad
    bytes_accessed = 4 * (b_pad * d_in + d_in * H + (H + 1) * k_pad + H
                          + b_pad * k_pad)
    transcendentals = 2 * b_pad * k_pad

    q = pl.pallas_call(
        _dec_kernel(float(alpha), K, k_pad),
        out_shape=jax.ShapeDtypeStruct((b_pad, k_pad), jnp.float32),
        grid=(n_blocks,),
        in_specs=[
            pl.BlockSpec((tb, d_in), lambda i: (i, 0)),    # streamed batch tile
            pl.BlockSpec((d_in, H), lambda i: (0, 0)),     # resident encoder W
            pl.BlockSpec((1, H), lambda i: (0, 0)),        # resident encoder b
            pl.BlockSpec((H, k_pad), lambda i: (0, 0)),    # resident centers^T
            pl.BlockSpec((1, k_pad), lambda i: (0, 0)),    # resident |c|^2
        ],
        out_specs=pl.BlockSpec((tb, k_pad), lambda i: (i, 0)),
        compiler_params=pltpu.CompilerParams(
            dimension_semantics=("parallel",)),
        cost_estimate=pl.CostEstimate(
            flops=flops,
            transcendentals=transcendentals,
            bytes_accessed=bytes_accessed),
    )(x, w, b, centers_t, c2)

    return q[:B, :K]


def dec_forward_ref(batch, w, b, centers, alpha=1.0):
    """Pure-JAX reference matching the PyTorch DEC forward."""
    feat = batch @ w + b                                   # encoder, x[0]
    diff = feat[:, None, :] - centers[None, :, :]          # (B, K, H)
    d = jnp.sum(diff * diff, axis=2)                       # (B, K)
    num = (1.0 + d / alpha) ** (-(alpha + 1.0) / 2.0)
    return num / jnp.sum(num, axis=1, keepdims=True)


if __name__ == "__main__":
    # Small shapes consistent with the module.
    B, D_in, H, K = 8, 32, 32, 16
    alpha = 1.0

    key = jax.random.PRNGKey(0)
    k_x, k_w, k_b, k_c = jax.random.split(key, 4)

    batch = jax.random.normal(k_x, (B, D_in), dtype=jnp.float32)
    # Deterministic synthetic encoder parameters (no checkpoint loading).
    w = jax.random.normal(k_w, (D_in, H), dtype=jnp.float32) * 0.1
    b = jax.random.normal(k_b, (1, H), dtype=jnp.float32) * 0.1
    centers = jax.random.normal(k_c, (K, H), dtype=jnp.float32)

    q = dec_forward(batch, w, b, centers, alpha)
    q = jax.block_until_ready(q)

    q_ref = dec_forward_ref(batch, w, b, centers, alpha)
    assert q.shape == (B, K)
    # Exact-reciprocal normalization -> rows sum to 1 tightly.
    assert jnp.allclose(jnp.sum(q, axis=1), 1.0, atol=1e-4)
    # approx=True EUP reciprocal in the t-kernel -> relaxed element tolerance.
    assert jnp.allclose(q, q_ref, atol=2e-3, rtol=2e-3)

    print("KERNEL_OK")
</pallas_src>

<mosaic_0001>
module attributes {stable_mosaic.version = 11 : i64} {
  func.func @kernel(%arg0: i32, %arg1: memref<8x32xf32, #tpu.memory_space<vmem>>, %arg2: memref<32x32xf32, #tpu.memory_space<vmem>>, %arg3: memref<1x32xf32, #tpu.memory_space<vmem>>, %arg4: memref<32x128xf32, #tpu.memory_space<vmem>>, %arg5: memref<1x128xf32, #tpu.memory_space<vmem>>, %arg6: memref<8x128xf32, #tpu.memory_space<vmem>>) attributes {dimension_semantics = [#tpu.dimension_semantics<parallel>], iteration_bounds = array<i64: 1>, scalar_prefetch = 0 : i64, scratch_operands = 0 : i64, tpu.core_type = #tpu.core_type<tc>, window_params = [{transform_indices = @transform_0, window_bounds = array<i64: 8, 32>}, {pipeline_mode = #tpu.pipeline_mode<synchronous>, transform_indices = @transform_1, window_bounds = array<i64: 32, 32>}, {pipeline_mode = #tpu.pipeline_mode<synchronous>, transform_indices = @transform_2, window_bounds = array<i64: 1, 32>}, {pipeline_mode = #tpu.pipeline_mode<synchronous>, transform_indices = @transform_3, window_bounds = array<i64: 32, 128>}, {pipeline_mode = #tpu.pipeline_mode<synchronous>, transform_indices = @transform_4, window_bounds = array<i64: 1, 128>}, {transform_indices = @transform_5, window_bounds = array<i64: 8, 128>}]} {
    %c0 = arith.constant 0 : index
    %c0_0 = arith.constant 0 : index
    %0 = vector.load %arg1[%c0, %c0_0] : memref<8x32xf32, #tpu.memory_space<vmem>>, vector<8x32xf32>
    %c0_1 = arith.constant 0 : index
    %c0_2 = arith.constant 0 : index
    %1 = vector.load %arg2[%c0_1, %c0_2] : memref<32x32xf32, #tpu.memory_space<vmem>>, vector<32x32xf32>
    %cst = arith.constant dense<0.000000e+00> : vector<8x32xf32>
    %2 = tpu.matmul %0, %1, %cst {dimension_numbers = #tpu.dot_dimension_numbers<[1], [0], [0], [1], [0, 0, 1, 1], [], []>} : vector<8x32xf32>, vector<32x32xf32>, vector<8x32xf32> -> vector<8x32xf32>
    %c0_3 = arith.constant 0 : index
    %c0_4 = arith.constant 0 : index
    %3 = vector.load %arg3[%c0_3, %c0_4] : memref<1x32xf32, #tpu.memory_space<vmem>>, vector<1x32xf32>
    %4 = vector.broadcast %3 : vector<1x32xf32> to vector<8x32xf32>
    %5 = arith.addf %2, %4 : vector<8x32xf32>
    %6 = arith.mulf %5, %5 : vector<8x32xf32>
    %cst_5 = arith.constant dense<0.000000e+00> : vector<8xf32>
    %7 = vector.multi_reduction <add>, %6, %cst_5 [1] : vector<8x32xf32> to vector<8xf32>
    %8 = vector.shape_cast %7 : vector<8xf32> to vector<8x1xf32>
    %c0_6 = arith.constant 0 : index
    %c0_7 = arith.constant 0 : index
    %9 = vector.load %arg4[%c0_6, %c0_7] : memref<32x128xf32, #tpu.memory_space<vmem>>, vector<32x128xf32>
    %cst_8 = arith.constant dense<0.000000e+00> : vector<8x128xf32>
    %10 = tpu.matmul %5, %9, %cst_8 {dimension_numbers = #tpu.dot_dimension_numbers<[1], [0], [0], [1], [0, 0, 1, 1], [], []>} : vector<8x32xf32>, vector<32x128xf32>, vector<8x128xf32> -> vector<8x128xf32>
    %c0_9 = arith.constant 0 : index
    %c0_10 = arith.constant 0 : index
    %11 = vector.load %arg5[%c0_9, %c0_10] : memref<1x128xf32, #tpu.memory_space<vmem>>, vector<1x128xf32>
    %12 = vector.broadcast %8 : vector<8x1xf32> to vector<8x128xf32>
    %13 = vector.broadcast %11 : vector<1x128xf32> to vector<8x128xf32>
    %14 = arith.addf %12, %13 : vector<8x128xf32>
    %cst_11 = arith.constant 2.000000e+00 : f32
    %15 = vector.broadcast %cst_11 : f32 to vector<8x128xf32>
    %16 = arith.mulf %15, %10 : vector<8x128xf32>
    %17 = arith.subf %14, %16 : vector<8x128xf32>
    %cst_12 = arith.constant 0.000000e+00 : f32
    %18 = vector.broadcast %cst_12 : f32 to vector<8x128xf32>
    %19 = arith.maximumf %17, %18 : vector<8x128xf32>
    %cst_13 = arith.constant 1.000000e+00 : f32
    %20 = vector.broadcast %cst_13 : f32 to vector<8x128xf32>
    %21 = arith.addf %20, %19 : vector<8x128xf32>
    %22 = tpu.reciprocal %21 {approx = true} : vector<8x128xf32> -> vector<8x128xf32>
    %23 = tpu.iota {dimensions = array<i32: 1>} : vector<8x128xi32>
    %c16_i32 = arith.constant 16 : i32
    %24 = vector.broadcast %c16_i32 : i32 to vector<8x128xi32>
    %25 = arith.cmpi slt, %23, %24 : vector<8x128xi32>
    %cst_14 = arith.constant 0.000000e+00 : f32
    %26 = vector.broadcast %cst_14 : f32 to vector<8x128xf32>
    %27 = arith.select %25, %22, %26 : vector<8x128xi1>, vector<8x128xf32>
    %cst_15 = arith.constant dense<0.000000e+00> : vector<8xf32>
    %28 = vector.multi_reduction <add>, %27, %cst_15 [1] : vector<8x128xf32> to vector<8xf32>
    %29 = vector.shape_cast %28 : vector<8xf32> to vector<8x1xf32>
    %30 = tpu.reciprocal %29 : vector<8x1xf32> -> vector<8x1xf32>
    %31 = vector.broadcast %30 : vector<8x1xf32> to vector<8x128xf32>
    %32 = arith.mulf %27, %31 : vector<8x128xf32>
    %c0_16 = arith.constant 0 : index
    %c0_17 = arith.constant 0 : index
    %33 = vector.load %arg6[%c0_16, %c0_17] : memref<8x128xf32, #tpu.memory_space<vmem>>, vector<8x128xf32>
    tpu.vector_store %arg6[%c0_16, %c0_17], %32 {strides = array<i32>} : memref<8x128xf32, #tpu.memory_space<vmem>>, vector<8x128xf32>,
    return
  }
  func.func @transform_0(%arg0: i32) -> (i32, i32) {
    %c0_i32 = arith.constant 0 : i32
    %c0_i32_0 = arith.constant 0 : i32
    return %arg0, %c0_i32 : i32, i32
  }
  func.func @transform_1(%arg0: i32) -> (i32, i32) {
    %c0_i32 = arith.constant 0 : i32
    %c0_i32_0 = arith.constant 0 : i32
    %c0_i32_1 = arith.constant 0 : i32
    return %c0_i32, %c0_i32_0 : i32, i32
  }
  func.func @transform_2(%arg0: i32) -> (i32, i32) {
    %c0_i32 = arith.constant 0 : i32
    %c0_i32_0 = arith.constant 0 : i32
    %c0_i32_1 = arith.constant 0 : i32
    return %c0_i32, %c0_i32_0 : i32, i32
  }
  func.func @transform_3(%arg0: i32) -> (i32, i32) {
    %c0_i32 = arith.constant 0 : i32
    %c0_i32_0 = arith.constant 0 : i32
    %c0_i32_1 = arith.constant 0 : i32
    return %c0_i32, %c0_i32_0 : i32, i32
  }
  func.func @transform_4(%arg0: i32) -> (i32, i32) {
    %c0_i32 = arith.constant 0 : i32
    %c0_i32_0 = arith.constant 0 : i32
    %c0_i32_1 = arith.constant 0 : i32
    return %c0_i32, %c0_i32_0 : i32, i32
  }
  func.func @transform_5(%arg0: i32) -> (i32, i32) {
    %c0_i32 = arith.constant 0 : i32
    %c0_i32_0 = arith.constant 0 : i32
    return %arg0, %c0_i32 : i32, i32
  }
}

</mosaic_0001>

<bundles_post_ra>
// kernel: tpu_custom_call.1
= control target key start
LH: loop header
LB: loop body
LE: loop exit
PB: predicated region body
PF: predicated region fallthrough
CT: control target
= control target key end

     0   :  { %10 = vsyncpa [#allocation3], 0  ;;  %s350_s0 = inlined_call_operand.hbm [shape: f32[8,32], index: 0, kind: input, shape index: {}]   ;;  %s351_s1 = inlined_call_operand.hbm [shape: f32[32,32], index: 1, kind: input, shape index: {}]   ;;  %s352_s2 = inlined_call_operand.vmem [shape: f32[1,32], index: 2, kind: input, shape index: {}]   ;;  %s353_s3 = inlined_call_operand.hbm [shape: f32[32,128], index: 3, kind: input, shape index: {}]   ;;  %s354_s4 = inlined_call_operand.vmem [shape: f32[1,128], index: 4, kind: input, shape index: {}]   ;;  %s355_s5 = inlined_call_operand.hbm [shape: f32[8,128], index: 5, kind: output, shape index: {}]  }
   0x1   :  { %11 = vsyncpa [#allocation6], 0  ;;  %s28_s20 = sshll.u32 %s351_s1, 4  ;;  %s29_s20 = int_to_ptr.hbm [resolvable:$true] %s28_s20 }
   0x2   :  { %12 = vsyncpa [#allocation4], 0  ;;  %s296_s21 = smov [#allocation5]   ;;  %s18_s25 = sshll.u32 %s350_s0, 4  ;;  %s19_s25 = int_to_ptr.hbm [resolvable:$true] %s18_s25 }
   0x3   :  { %s30_s22 = sshll.u32 %s296_s21, 4  ;;  %s297_s26 = smov 128   ;;  %s31_s22 = int_to_ptr.vmem [resolvable:$true] %s30_s22 }
   0x4   :  { %s298_s27 = smov 8   ;;  %s299_s28 = smov [#allocation2]  }
   0x5   :  { %36 = dma.hbm_to_vmem [thread:$0]  %s29_s20, 512, %s31_s22, [#allocation6], %s297_s26, %s297_s26, %s298_s27  }
   0x6   :  { %s20_s29 = sshll.u32 %s299_s28, 4  ;;  %s43_s7 = sshll.u32 %s353_s3, 4  ;;  %s21_s29 = int_to_ptr.vmem [resolvable:$true] %s20_s29  ;;  %s44_s7 = int_to_ptr.hbm [resolvable:$true] %s43_s7 }
   0x7   :  { %23 = dma.hbm_to_vmem [thread:$0]  %s19_s25, 128, %s21_s29, [#allocation3]  }
   0x8   :  { %s300_s1 = smov [#allocation7]  }
   0x9   :  { %s45_s8 = sshll.u32 %s300_s1, 4  ;;  %s46_s8 = int_to_ptr.vmem [resolvable:$true] %s45_s8 }
   0xa   :  { %51 = dma.hbm_to_vmem [thread:$0]  %s44_s7, 512, %s46_s8, [#allocation6], %s297_s26, %s297_s26, %s298_s27  }
   0xb   :  { %290 = dma.done.wait [#allocation3], 128  }
   0xc   :  { %291 = vsyncadd [#allocation3], 4294967168 }
   0xd   :  { %292 = dma.done.wait [#allocation6], 1024  }
   0xe   :  { %293 = vsyncadd [#allocation6], 4294966272  ;;  %v70_v0 = vld [vmem:[#allocation5 + $0x18] sm:$0xff]  ;;  %v69_v1 = vld [vmem:[#allocation5 + $0x10] sm:$0xff]  ;;  %vm75_vm0 = vcmask 261120   ;;  %v140_v21 = vlaneseq  ;;  %s169_s13 = sshll.u32 %s355_s5, 4  ;;  %s170_s13 = int_to_ptr.hbm [resolvable:$true] %s169_s13 }
   0xf   :  { %91 = vmatpush.msra.mxu0 %v70_v0  ;;  %v106_v2 = vld [vmem:[#allocation7 + $0x18] sm:$0xff]  ;;  %v68_v3 = vld [vmem:[#allocation5 + $0x8] sm:$0xff]  ;;  %v105_v4 = vld [vmem:[#allocation7 + $0x10] sm:$0xff] }
  0x10   :  { %122 = vmatpush.msra.mxu1 %v106_v2  ;;  %v67_v5 = vld [vmem:[#allocation5] sm:$0xff]  ;;  %v66_v6 = vld [vmem:[#allocation2] sm:$0xff]  ;;  %v104_v7 = vld [vmem:[#allocation7 + $0x8] sm:$0xff]  ;;  %v141_v23 = vand.u32 127, %v140_v21 }
  0x11   :  { %92 = vmatpush.msra.mxu0 %v69_v1  ;;  %v103_v8 = vld [vmem:[#allocation7] sm:$0xff]  ;;  %v188_v9 = vld [vmem:[%s352_s2] ss:$0 sm:$0xff]  ;;  %s301_s2 = smov [#allocation8]  }
  0x12   :  { %123 = vmatpush.msra.mxu1 %v105_v4  ;;  %v189_v14 = vld [vmem:[%s354_s4] ss:$0 sm:$0xff]  ;;  %vm142_vm1 = vcmp.lt.s32.totalorder %v141_v23, 16  ;;  %s167_s4 = sshll.u32 %s301_s2, 4  ;;  %s168_s4 = int_to_ptr.vmem [resolvable:$true] %s167_s4 }
  0x13   :  { %93 = vmatpush.msra.mxu0 %v68_v3 }
  0x14   :  { %124 = vmatpush.msra.mxu1 %v104_v7 }
  0x15   :  { %94 = vmatpush.msra.mxu0 %v67_v5 }
  0x16   :  { %180 = vmatmul.msk.f32.vlgmr.msra.gmra.mxu0 %vm75_vm0, %v66_v6  ;;  %125 = vmatpush.msra.mxu1 %v103_v8 }
  0x93   :  { %v96_v10 = vpop.f32.mrf.mxu0 }
  0x94   :  { %v97_v11 = vadd.f32 %v188_v9, %v96_v10 }
  0x96   :  { %181 = vmatmul.msk.f32.vlgmr.msra.gmra.mxu1 %vm75_vm0, %v97_v11  ;;  %v99_v12 = vmul.f32 %v97_v11, %v97_v11 }
  0x98   :  { %v100_v13 = vsel %vm75_vm0, %v99_v12, 0.0 }
  0x99   :  { %101 = vadd.xlane.f32.xlu0 %v100_v13 }
 0x10c   :  { %v102_v15 = vpop.xlane.xlu0 %101 }
 0x10d   :  { %v134_v17 = vadd.f32 %v189_v14, %v102_v15 }
 0x113   :  { %v127_v16 = vpop.f32.mrf.mxu1 }
 0x114   :  { %v135_v18 = vmul.f32 2.0, %v127_v16 }
 0x116   :  { %v136_v19 = vsub.f32 %v134_v17, %v135_v18 }
 0x118   :  { %v137_v20 = vmax.f32 %v136_v19, 0.0 }
 0x11a   :  { %v138_v22 = vadd.f32 1.0, %v137_v20 }
 0x11c   :  { %190 = vrcp.f32 %v138_v22 }
 0x122   :  { %v191_v24 = vpop.eup %190 }
 0x123   :  { %v143_v25 = vsel %vm142_vm1, %v191_v24, 0.0 }
 0x124   :  { %144 = vadd.xlane.f32.xlu0 %v143_v25 }
 0x197   :  { %v145_v26 = vpop.xlane.xlu0 %144 }
 0x198   :  { %192 = vrcp.f32 %v145_v26  ;;  %v157_v30 = vand.u32 2147483648, %v145_v26  ;;  %v155_v32 = vand.u32 2147483647, %v145_v26  ;;  %vm151_vm3 = vweird.f32 %v145_v26 }
 0x19a   :  { %v158_v34 = vor.u32 1.1754944e-38, %v157_v30  ;;  %vm156_vm5 = vcmp.eq.f32.partialorder %v155_v32, 8.507059e+37 }
 0x19e   :  { %v193_v27 = vpop.eup %192 }
 0x19f   :  { %v147_v28 = vmul.f32 %v193_v27, %v145_v26  ;;  %vm152_vm2 = vweird.f32 %v193_v27 }
 0x1a0   :  { %vm153_vm4 = vmor %vm151_vm3, %vm152_vm2 }
 0x1a1   :  { %v148_v29 = vsub.f32 1.0, %v147_v28 }
 0x1a3   :  { %v149_v31 = vmul.f32 %v193_v27, %v148_v29 }
 0x1a5   :  { %v150_v33 = vadd.f32 %v193_v27, %v149_v31 }
 0x1a7   :  { %v154_v35 = vsel %vm153_vm4, %v193_v27, %v150_v33 }
 0x1a8   :  { %v159_v36 = vsel %vm156_vm5, %v158_v34, %v154_v35 }
 0x1a9   :  { %v160_v37 = vmul.f32 %v159_v36, %v143_v25 }
 0x1ab   :  { %161 = vst [vmem:[#allocation8] sm:$0xff] %v160_v37 }
 0x1ac   :  { %172 = dma.vmem_to_hbm [thread:$0]  %s168_s4, 128, %s170_s13, [#allocation4]  }
 0x1ad   :  { %294 = dma.done.wait [#allocation4], 128  }
 0x1ae   :  { %295 = vsyncadd [#allocation4], 4294967168 }
 0x1af   :  { %177 = vsyncpa [#allocation3], 1 }
 0x1b0   :  { %178 = vsyncpa [#allocation6], 1 }
 0x1b1   :  { %179 = vsyncpa [#allocation4], 1 }

</bundles_post_ra>
